<compile_context>
chip_gen: v7x
topology: tpu7x:2x2x1
jax: 0.10.0
libtpu: 0.0.40
codegen_flags: <defaults>
</compile_context>

<pallas_src>
import functools
import math

import jax
import jax.numpy as jnp
from jax import lax
from jax.experimental import pallas as pl
from jax.experimental.pallas import tpu as pltpu


# ----------------------------- fused MHA kernel ------------------------------

def _mha_kernel(q_ref, k_ref, v_ref, mask_ref,
                wq_ref, wk_ref, wv_ref, wo_ref,
                o_ref, *, n_heads, d_k):
    """One batch element: projections + per-head attention + output projection.

    q_ref: (Sq, D)   k_ref / v_ref: (Sk, D)   mask_ref: (Sq, Sk) int32
    w*_ref: (D, D) pre-transposed (so the kernel does plain x @ W_T on the MXU)
    o_ref: (Sq, D)
    """
    scale = 1.0 / math.sqrt(d_k)

    # Input projections (nn.Linear, bias=False).  Pre-scale Q by 1/sqrt(d_k)
    # once instead of scaling every per-head score matrix.
    q_p = jnp.dot(q_ref[...], wq_ref[...],
                  preferred_element_type=jnp.float32) * scale      # (Sq, D)
    k_p = jnp.dot(k_ref[...], wk_ref[...],
                  preferred_element_type=jnp.float32)              # (Sk, D)
    v_p = jnp.dot(v_ref[...], wv_ref[...],
                  preferred_element_type=jnp.float32)              # (Sk, D)
    m = mask_ref[...]                                              # (Sq, Sk)

    # Per-head attention with static lane slices (no transposes).
    ctx_parts = []
    for h in range(n_heads):
        sl = slice(h * d_k, (h + 1) * d_k)
        q_h = q_p[:, sl]                                           # (Sq, d_k)
        k_h = k_p[:, sl]                                           # (Sk, d_k)
        v_h = v_p[:, sl]                                           # (Sk, d_k)

        # scores = Q_h @ K_h^T (d_k already folded into Q), mask, softmax.
        s = lax.dot_general(q_h, k_h, (((1,), (1,)), ((), ())),
                            preferred_element_type=jnp.float32)    # (Sq, Sk)
        s = jnp.where(m == 0, -1e9, s)
        s = s - jnp.max(s, axis=-1, keepdims=True)
        e = jnp.exp(s)
        l = jnp.sum(e, axis=-1, keepdims=True)

        # TODO(synk): training-mode dropout on the attention probabilities is
        # identity here; it would use pltpu.prng_seed / prng_random_bits.
        ctx_parts.append(
            jnp.dot(e, v_h, preferred_element_type=jnp.float32) / l)

    ctx = jnp.concatenate(ctx_parts, axis=-1)                      # (Sq, D)

    # Output projection, written back head-merged and lane-dense.
    o_ref[...] = jnp.dot(ctx, wo_ref[...],
                         preferred_element_type=jnp.float32).astype(o_ref.dtype)


def multi_head_attention_block(q, k, v, mask, wq, wk, wv, wo, *, h):
    """Forward of MultiHeadAttentionBlock (eval mode, dropout = identity).

    q,k,v: (B, S, d_model); mask: broadcastable to (B, 1, Sq, Sk) (0 = masked);
    wq/wk/wv/wo: (d_model, d_model) in PyTorch nn.Linear layout (out, in).
    """
    B, Sq, D = q.shape
    Sk = k.shape[1]
    assert D % h == 0
    d_k = D // h

    # Layout-only host-side prep: transpose weights once, broadcast mask.
    wq_t, wk_t, wv_t, wo_t = wq.T, wk.T, wv.T, wo.T
    mask_b = jnp.broadcast_to(mask, (B, 1, Sq, Sk)).astype(jnp.int32)

    kernel = functools.partial(_mha_kernel, n_heads=h, d_k=d_k)

    flops = B * (2 * Sq * D * D * 2 + 2 * Sk * D * D * 2    # rough: 4 projections
                 + h * (2 * Sq * Sk * d_k) * 2)              # + attention matmuls
    cost = pl.CostEstimate(
        flops=flops,
        transcendentals=B * h * Sq * Sk,
        bytes_accessed=4 * (B * Sq * D * 2 + 2 * B * Sk * D
                            + B * Sq * Sk + 4 * D * D))

    weight_spec = pl.BlockSpec((D, D), lambda b: (0, 0))   # resident across grid

    out = pl.pallas_call(
        kernel,
        out_shape=jax.ShapeDtypeStruct((B, Sq, D), q.dtype),
        grid_spec=pltpu.PrefetchScalarGridSpec(
            num_scalar_prefetch=0,
            grid=(B,),
            in_specs=[
                pl.BlockSpec((None, Sq, D), lambda b: (b, 0, 0)),
                pl.BlockSpec((None, Sk, D), lambda b: (b, 0, 0)),
                pl.BlockSpec((None, Sk, D), lambda b: (b, 0, 0)),
                pl.BlockSpec((None, None, Sq, Sk), lambda b: (b, 0, 0, 0)),
                weight_spec, weight_spec, weight_spec, weight_spec,
            ],
            out_specs=pl.BlockSpec((None, Sq, D), lambda b: (b, 0, 0)),
        ),
        compiler_params=pltpu.CompilerParams(
            dimension_semantics=("parallel",)),
        cost_estimate=cost,
    )(q, k, v, mask_b, wq_t, wk_t, wv_t, wo_t)
    return out


# ----------------------------------- test -------------------------------------

if __name__ == "__main__":
    batch, seq, d_model, n_heads = 2, 8, 32, 4

    key = jax.random.PRNGKey(0)
    kq, kk, kv, kwq, kwk, kwv, kwo = jax.random.split(key, 7)

    q = jax.random.normal(kq, (batch, seq, d_model), dtype=jnp.float32)
    k = jax.random.normal(kk, (batch, seq, d_model), dtype=jnp.float32)
    v = jax.random.normal(kv, (batch, seq, d_model), dtype=jnp.float32)

    lim = 1.0 / math.sqrt(d_model)
    wq = jax.random.uniform(kwq, (d_model, d_model), jnp.float32, -lim, lim)
    wk = jax.random.uniform(kwk, (d_model, d_model), jnp.float32, -lim, lim)
    wv = jax.random.uniform(kwv, (d_model, d_model), jnp.float32, -lim, lim)
    wo = jax.random.uniform(kwo, (d_model, d_model), jnp.float32, -lim, lim)

    # Causal mask broadcast over heads; PyTorch does masked_fill(mask == 0, -1e9).
    mask = jnp.broadcast_to(
        jnp.tril(jnp.ones((seq, seq), dtype=jnp.int32)),
        (batch, 1, seq, seq))

    out = multi_head_attention_block(q, k, v, mask, wq, wk, wv, wo, h=n_heads)
    out = jax.block_until_ready(out)

    # Pure-JAX reference (same math as the PyTorch module, eval mode).
    def ref_forward(q, k, v, mask):
        d_k = d_model // n_heads

        def split(x, w):
            y = x @ w.T
            return y.reshape(batch, -1, n_heads, d_k).transpose(0, 2, 1, 3)

        Q, K, V = split(q, wq), split(k, wk), split(v, wv)
        s = (Q @ jnp.swapaxes(K, -2, -1)) / math.sqrt(d_k)
        s = jnp.where(mask == 0, -1e9, s)
        p = jax.nn.softmax(s, axis=-1)
        x = (p @ V).transpose(0, 2, 1, 3).reshape(batch, -1, d_model)
        return x @ wo.T

    ref = ref_forward(q, k, v, mask)
    assert out.shape == (batch, seq, d_model)
    err = float(jnp.max(jnp.abs(out - ref)))
    assert jnp.allclose(out, ref, atol=1e-3, rtol=1e-3), f"max abs err {err}"

    print("KERNEL_OK")
</pallas_src>

<mosaic_0001>
module attributes {stable_mosaic.version = 11 : i64} {
  func.func @_mha_kernel(%arg0: i32, %arg1: memref<1x8x32xf32, #tpu.memory_space<vmem>>, %arg2: memref<1x8x32xf32, #tpu.memory_space<vmem>>, %arg3: memref<1x8x32xf32, #tpu.memory_space<vmem>>, %arg4: memref<1x1x8x8xi32, #tpu.memory_space<vmem>>, %arg5: memref<32x32xf32, #tpu.memory_space<vmem>>, %arg6: memref<32x32xf32, #tpu.memory_space<vmem>>, %arg7: memref<32x32xf32, #tpu.memory_space<vmem>>, %arg8: memref<32x32xf32, #tpu.memory_space<vmem>>, %arg9: memref<1x8x32xf32, #tpu.memory_space<vmem>>) attributes {dimension_semantics = [#tpu.dimension_semantics<parallel>], iteration_bounds = array<i64: 2>, scalar_prefetch = 0 : i64, scratch_operands = 0 : i64, tpu.core_type = #tpu.core_type<tc>, window_params = [{transform_indices = @transform_0, window_bounds = array<i64: 1, 8, 32>}, {transform_indices = @transform_1, window_bounds = array<i64: 1, 8, 32>}, {transform_indices = @transform_2, window_bounds = array<i64: 1, 8, 32>}, {transform_indices = @transform_3, window_bounds = array<i64: 1, 1, 8, 8>}, {pipeline_mode = #tpu.pipeline_mode<synchronous>, transform_indices = @transform_4, window_bounds = array<i64: 32, 32>}, {pipeline_mode = #tpu.pipeline_mode<synchronous>, transform_indices = @transform_5, window_bounds = array<i64: 32, 32>}, {pipeline_mode = #tpu.pipeline_mode<synchronous>, transform_indices = @transform_6, window_bounds = array<i64: 32, 32>}, {pipeline_mode = #tpu.pipeline_mode<synchronous>, transform_indices = @transform_7, window_bounds = array<i64: 32, 32>}, {transform_indices = @transform_8, window_bounds = array<i64: 1, 8, 32>}]} {
    %c0 = arith.constant 0 : index
    %c0_0 = arith.constant 0 : index
    %c0_1 = arith.constant 0 : index
    %0 = vector.load %arg1[%c0, %c0_0, %c0_1] : memref<1x8x32xf32, #tpu.memory_space<vmem>>, vector<1x8x32xf32>
    %1 = vector.shape_cast %0 : vector<1x8x32xf32> to vector<8x32xf32>
    %c0_2 = arith.constant 0 : index
    %c0_3 = arith.constant 0 : index
    %2 = vector.load %arg5[%c0_2, %c0_3] : memref<32x32xf32, #tpu.memory_space<vmem>>, vector<32x32xf32>
    %cst = arith.constant dense<0.000000e+00> : vector<8x32xf32>
    %3 = tpu.matmul %1, %2, %cst {dimension_numbers = #tpu.dot_dimension_numbers<[1], [0], [0], [1], [0, 0, 1, 1], [], []>} : vector<8x32xf32>, vector<32x32xf32>, vector<8x32xf32> -> vector<8x32xf32>
    %cst_4 = arith.constant 0.353553385 : f32
    %4 = vector.broadcast %cst_4 : f32 to vector<8x32xf32>
    %5 = arith.mulf %3, %4 : vector<8x32xf32>
    %c0_5 = arith.constant 0 : index
    %c0_6 = arith.constant 0 : index
    %c0_7 = arith.constant 0 : index
    %6 = vector.load %arg2[%c0_5, %c0_6, %c0_7] : memref<1x8x32xf32, #tpu.memory_space<vmem>>, vector<1x8x32xf32>
    %7 = vector.shape_cast %6 : vector<1x8x32xf32> to vector<8x32xf32>
    %c0_8 = arith.constant 0 : index
    %c0_9 = arith.constant 0 : index
    %8 = vector.load %arg6[%c0_8, %c0_9] : memref<32x32xf32, #tpu.memory_space<vmem>>, vector<32x32xf32>
    %cst_10 = arith.constant dense<0.000000e+00> : vector<8x32xf32>
    %9 = tpu.matmul %7, %8, %cst_10 {dimension_numbers = #tpu.dot_dimension_numbers<[1], [0], [0], [1], [0, 0, 1, 1], [], []>} : vector<8x32xf32>, vector<32x32xf32>, vector<8x32xf32> -> vector<8x32xf32>
    %c0_11 = arith.constant 0 : index
    %c0_12 = arith.constant 0 : index
    %c0_13 = arith.constant 0 : index
    %10 = vector.load %arg3[%c0_11, %c0_12, %c0_13] : memref<1x8x32xf32, #tpu.memory_space<vmem>>, vector<1x8x32xf32>
    %11 = vector.shape_cast %10 : vector<1x8x32xf32> to vector<8x32xf32>
    %c0_14 = arith.constant 0 : index
    %c0_15 = arith.constant 0 : index
    %12 = vector.load %arg7[%c0_14, %c0_15] : memref<32x32xf32, #tpu.memory_space<vmem>>, vector<32x32xf32>
    %cst_16 = arith.constant dense<0.000000e+00> : vector<8x32xf32>
    %13 = tpu.matmul %11, %12, %cst_16 {dimension_numbers = #tpu.dot_dimension_numbers<[1], [0], [0], [1], [0, 0, 1, 1], [], []>} : vector<8x32xf32>, vector<32x32xf32>, vector<8x32xf32> -> vector<8x32xf32>
    %c0_17 = arith.constant 0 : index
    %c0_18 = arith.constant 0 : index
    %c0_19 = arith.constant 0 : index
    %c0_20 = arith.constant 0 : index
    %14 = vector.load %arg4[%c0_17, %c0_18, %c0_19, %c0_20] : memref<1x1x8x8xi32, #tpu.memory_space<vmem>>, vector<1x1x8x8xi32>
    %15 = vector.shape_cast %14 : vector<1x1x8x8xi32> to vector<8x8xi32>
    %16 = vector.extract_strided_slice %5 {offsets = [0, 0], sizes = [8, 8], strides = [1, 1]} : vector<8x32xf32> to vector<8x8xf32>
    %17 = vector.extract_strided_slice %9 {offsets = [0, 0], sizes = [8, 8], strides = [1, 1]} : vector<8x32xf32> to vector<8x8xf32>
    %18 = vector.extract_strided_slice %13 {offsets = [0, 0], sizes = [8, 8], strides = [1, 1]} : vector<8x32xf32> to vector<8x8xf32>
    %cst_21 = arith.constant dense<0.000000e+00> : vector<8x8xf32>
    %19 = tpu.matmul %16, %17, %cst_21 {dimension_numbers = #tpu.dot_dimension_numbers<[1], [1], [0], [0], [0, 0, 1, 0], [], []>} : vector<8x8xf32>, vector<8x8xf32>, vector<8x8xf32> -> vector<8x8xf32>
    %c0_i32 = arith.constant 0 : i32
    %20 = vector.broadcast %c0_i32 : i32 to vector<8x8xi32>
    %21 = arith.cmpi eq, %15, %20 : vector<8x8xi32>
    %cst_22 = arith.constant -1.000000e+09 : f32
    %22 = vector.broadcast %cst_22 : f32 to vector<8x8xf32>
    %23 = arith.select %21, %22, %19 : vector<8x8xi1>, vector<8x8xf32>
    %cst_23 = arith.constant dense<0xFF800000> : vector<8xf32>
    %24 = vector.multi_reduction <maximumf>, %23, %cst_23 [1] : vector<8x8xf32> to vector<8xf32>
    %25 = vector.shape_cast %24 : vector<8xf32> to vector<8x1xf32>
    %26 = vector.broadcast %25 : vector<8x1xf32> to vector<8x8xf32>
    %27 = arith.subf %23, %26 : vector<8x8xf32>
    %28 = math.exp %27 : vector<8x8xf32>
    %cst_24 = arith.constant dense<0.000000e+00> : vector<8xf32>
    %29 = vector.multi_reduction <add>, %28, %cst_24 [1] : vector<8x8xf32> to vector<8xf32>
    %30 = vector.shape_cast %29 : vector<8xf32> to vector<8x1xf32>
    %cst_25 = arith.constant dense<0.000000e+00> : vector<8x8xf32>
    %31 = tpu.matmul %28, %18, %cst_25 {dimension_numbers = #tpu.dot_dimension_numbers<[1], [0], [0], [1], [0, 0, 1, 1], [], []>} : vector<8x8xf32>, vector<8x8xf32>, vector<8x8xf32> -> vector<8x8xf32>
    %32 = vector.broadcast %30 : vector<8x1xf32> to vector<8x8xf32>
    %33 = arith.divf %31, %32 : vector<8x8xf32>
    %34 = vector.extract_strided_slice %5 {offsets = [0, 8], sizes = [8, 8], strides = [1, 1]} : vector<8x32xf32> to vector<8x8xf32>
    %35 = vector.extract_strided_slice %9 {offsets = [0, 8], sizes = [8, 8], strides = [1, 1]} : vector<8x32xf32> to vector<8x8xf32>
    %36 = vector.extract_strided_slice %13 {offsets = [0, 8], sizes = [8, 8], strides = [1, 1]} : vector<8x32xf32> to vector<8x8xf32>
    %cst_26 = arith.constant dense<0.000000e+00> : vector<8x8xf32>
    %37 = tpu.matmul %34, %35, %cst_26 {dimension_numbers = #tpu.dot_dimension_numbers<[1], [1], [0], [0], [0, 0, 1, 0], [], []>} : vector<8x8xf32>, vector<8x8xf32>, vector<8x8xf32> -> vector<8x8xf32>
    %c0_i32_27 = arith.constant 0 : i32
    %38 = vector.broadcast %c0_i32_27 : i32 to vector<8x8xi32>
    %39 = arith.cmpi eq, %15, %38 : vector<8x8xi32>
    %cst_28 = arith.constant -1.000000e+09 : f32
    %40 = vector.broadcast %cst_28 : f32 to vector<8x8xf32>
    %41 = arith.select %39, %40, %37 : vector<8x8xi1>, vector<8x8xf32>
    %cst_29 = arith.constant dense<0xFF800000> : vector<8xf32>
    %42 = vector.multi_reduction <maximumf>, %41, %cst_29 [1] : vector<8x8xf32> to vector<8xf32>
    %43 = vector.shape_cast %42 : vector<8xf32> to vector<8x1xf32>
    %44 = vector.broadcast %43 : vector<8x1xf32> to vector<8x8xf32>
    %45 = arith.subf %41, %44 : vector<8x8xf32>
    %46 = math.exp %45 : vector<8x8xf32>
    %cst_30 = arith.constant dense<0.000000e+00> : vector<8xf32>
    %47 = vector.multi_reduction <add>, %46, %cst_30 [1] : vector<8x8xf32> to vector<8xf32>
    %48 = vector.shape_cast %47 : vector<8xf32> to vector<8x1xf32>
    %cst_31 = arith.constant dense<0.000000e+00> : vector<8x8xf32>
    %49 = tpu.matmul %46, %36, %cst_31 {dimension_numbers = #tpu.dot_dimension_numbers<[1], [0], [0], [1], [0, 0, 1, 1], [], []>} : vector<8x8xf32>, vector<8x8xf32>, vector<8x8xf32> -> vector<8x8xf32>
    %50 = vector.broadcast %48 : vector<8x1xf32> to vector<8x8xf32>
    %51 = arith.divf %49, %50 : vector<8x8xf32>
    %52 = vector.extract_strided_slice %5 {offsets = [0, 16], sizes = [8, 8], strides = [1, 1]} : vector<8x32xf32> to vector<8x8xf32>
    %53 = vector.extract_strided_slice %9 {offsets = [0, 16], sizes = [8, 8], strides = [1, 1]} : vector<8x32xf32> to vector<8x8xf32>
    %54 = vector.extract_strided_slice %13 {offsets = [0, 16], sizes = [8, 8], strides = [1, 1]} : vector<8x32xf32> to vector<8x8xf32>
    %cst_32 = arith.constant dense<0.000000e+00> : vector<8x8xf32>
    %55 = tpu.matmul %52, %53, %cst_32 {dimension_numbers = #tpu.dot_dimension_numbers<[1], [1], [0], [0], [0, 0, 1, 0], [], []>} : vector<8x8xf32>, vector<8x8xf32>, vector<8x8xf32> -> vector<8x8xf32>
    %c0_i32_33 = arith.constant 0 : i32
    %56 = vector.broadcast %c0_i32_33 : i32 to vector<8x8xi32>
    %57 = arith.cmpi eq, %15, %56 : vector<8x8xi32>
    %cst_34 = arith.constant -1.000000e+09 : f32
    %58 = vector.broadcast %cst_34 : f32 to vector<8x8xf32>
    %59 = arith.select %57, %58, %55 : vector<8x8xi1>, vector<8x8xf32>
    %cst_35 = arith.constant dense<0xFF800000> : vector<8xf32>
    %60 = vector.multi_reduction <maximumf>, %59, %cst_35 [1] : vector<8x8xf32> to vector<8xf32>
    %61 = vector.shape_cast %60 : vector<8xf32> to vector<8x1xf32>
    %62 = vector.broadcast %61 : vector<8x1xf32> to vector<8x8xf32>
    %63 = arith.subf %59, %62 : vector<8x8xf32>
    %64 = math.exp %63 : vector<8x8xf32>
    %cst_36 = arith.constant dense<0.000000e+00> : vector<8xf32>
    %65 = vector.multi_reduction <add>, %64, %cst_36 [1] : vector<8x8xf32> to vector<8xf32>
    %66 = vector.shape_cast %65 : vector<8xf32> to vector<8x1xf32>
    %cst_37 = arith.constant dense<0.000000e+00> : vector<8x8xf32>
    %67 = tpu.matmul %64, %54, %cst_37 {dimension_numbers = #tpu.dot_dimension_numbers<[1], [0], [0], [1], [0, 0, 1, 1], [], []>} : vector<8x8xf32>, vector<8x8xf32>, vector<8x8xf32> -> vector<8x8xf32>
    %68 = vector.broadcast %66 : vector<8x1xf32> to vector<8x8xf32>
    %69 = arith.divf %67, %68 : vector<8x8xf32>
    %70 = vector.extract_strided_slice %5 {offsets = [0, 24], sizes = [8, 8], strides = [1, 1]} : vector<8x32xf32> to vector<8x8xf32>
    %71 = vector.extract_strided_slice %9 {offsets = [0, 24], sizes = [8, 8], strides = [1, 1]} : vector<8x32xf32> to vector<8x8xf32>
    %72 = vector.extract_strided_slice %13 {offsets = [0, 24], sizes = [8, 8], strides = [1, 1]} : vector<8x32xf32> to vector<8x8xf32>
    %cst_38 = arith.constant dense<0.000000e+00> : vector<8x8xf32>
    %73 = tpu.matmul %70, %71, %cst_38 {dimension_numbers = #tpu.dot_dimension_numbers<[1], [1], [0], [0], [0, 0, 1, 0], [], []>} : vector<8x8xf32>, vector<8x8xf32>, vector<8x8xf32> -> vector<8x8xf32>
    %c0_i32_39 = arith.constant 0 : i32
    %74 = vector.broadcast %c0_i32_39 : i32 to vector<8x8xi32>
    %75 = arith.cmpi eq, %15, %74 : vector<8x8xi32>
    %cst_40 = arith.constant -1.000000e+09 : f32
    %76 = vector.broadcast %cst_40 : f32 to vector<8x8xf32>
    %77 = arith.select %75, %76, %73 : vector<8x8xi1>, vector<8x8xf32>
    %cst_41 = arith.constant dense<0xFF800000> : vector<8xf32>
    %78 = vector.multi_reduction <maximumf>, %77, %cst_41 [1] : vector<8x8xf32> to vector<8xf32>
    %79 = vector.shape_cast %78 : vector<8xf32> to vector<8x1xf32>
    %80 = vector.broadcast %79 : vector<8x1xf32> to vector<8x8xf32>
    %81 = arith.subf %77, %80 : vector<8x8xf32>
    %82 = math.exp %81 : vector<8x8xf32>
    %cst_42 = arith.constant dense<0.000000e+00> : vector<8xf32>
    %83 = vector.multi_reduction <add>, %82, %cst_42 [1] : vector<8x8xf32> to vector<8xf32>
    %84 = vector.shape_cast %83 : vector<8xf32> to vector<8x1xf32>
    %cst_43 = arith.constant dense<0.000000e+00> : vector<8x8xf32>
    %85 = tpu.matmul %82, %72, %cst_43 {dimension_numbers = #tpu.dot_dimension_numbers<[1], [0], [0], [1], [0, 0, 1, 1], [], []>} : vector<8x8xf32>, vector<8x8xf32>, vector<8x8xf32> -> vector<8x8xf32>
    %86 = vector.broadcast %84 : vector<8x1xf32> to vector<8x8xf32>
    %87 = arith.divf %85, %86 : vector<8x8xf32>
    %88 = tpu.concatenate %33, %51, %69, %87 in 1 : vector<8x8xf32>, vector<8x8xf32>, vector<8x8xf32>, vector<8x8xf32> -> vector<8x32xf32>
    %c0_44 = arith.constant 0 : index
    %c0_45 = arith.constant 0 : index
    %89 = vector.load %arg8[%c0_44, %c0_45] : memref<32x32xf32, #tpu.memory_space<vmem>>, vector<32x32xf32>
    %cst_46 = arith.constant dense<0.000000e+00> : vector<8x32xf32>
    %90 = tpu.matmul %88, %89, %cst_46 {dimension_numbers = #tpu.dot_dimension_numbers<[1], [0], [0], [1], [0, 0, 1, 1], [], []>} : vector<8x32xf32>, vector<32x32xf32>, vector<8x32xf32> -> vector<8x32xf32>
    %c0_47 = arith.constant 0 : index
    %c0_48 = arith.constant 0 : index
    %c0_49 = arith.constant 0 : index
    %91 = vector.load %arg9[%c0_47, %c0_48, %c0_49] : memref<1x8x32xf32, #tpu.memory_space<vmem>>, vector<1x8x32xf32>
    %92 = vector.shape_cast %91 : vector<1x8x32xf32> to vector<8x32xf32>
    %93 = vector.shape_cast %90 : vector<8x32xf32> to vector<1x8x32xf32>
    tpu.vector_store %arg9[%c0_47, %c0_48, %c0_49], %93 {strides = array<i32>} : memref<1x8x32xf32, #tpu.memory_space<vmem>>, vector<1x8x32xf32>,
    return
  }
  func.func @transform_0(%arg0: i32) -> (i32, i32, i32) {
    %c0_i32 = arith.constant 0 : i32
    %c0_i32_0 = arith.constant 0 : i32
    %c0_i32_1 = arith.constant 0 : i32
    return %arg0, %c0_i32, %c0_i32_0 : i32, i32, i32
  }
  func.func @transform_1(%arg0: i32) -> (i32, i32, i32) {
    %c0_i32 = arith.constant 0 : i32
    %c0_i32_0 = arith.constant 0 : i32
    %c0_i32_1 = arith.constant 0 : i32
    return %arg0, %c0_i32, %c0_i32_0 : i32, i32, i32
  }
  func.func @transform_2(%arg0: i32) -> (i32, i32, i32) {
    %c0_i32 = arith.constant 0 : i32
    %c0_i32_0 = arith.constant 0 : i32
    %c0_i32_1 = arith.constant 0 : i32
    return %arg0, %c0_i32, %c0_i32_0 : i32, i32, i32
  }
  func.func @transform_3(%arg0: i32) -> (i32, i32, i32, i32) {
    %c0_i32 = arith.constant 0 : i32
    %c0_i32_0 = arith.constant 0 : i32
    %c0_i32_1 = arith.constant 0 : i32
    %c0_i32_2 = arith.constant 0 : i32
    return %arg0, %c0_i32, %c0_i32_0, %c0_i32_1 : i32, i32, i32, i32
  }
  func.func @transform_4(%arg0: i32) -> (i32, i32) {
    %c0_i32 = arith.constant 0 : i32
    %c0_i32_0 = arith.constant 0 : i32
    %c0_i32_1 = arith.constant 0 : i32
    return %c0_i32, %c0_i32_0 : i32, i32
  }
  func.func @transform_5(%arg0: i32) -> (i32, i32) {
    %c0_i32 = arith.constant 0 : i32
    %c0_i32_0 = arith.constant 0 : i32
    %c0_i32_1 = arith.constant 0 : i32
    return %c0_i32, %c0_i32_0 : i32, i32
  }
  func.func @transform_6(%arg0: i32) -> (i32, i32) {
    %c0_i32 = arith.constant 0 : i32
    %c0_i32_0 = arith.constant 0 : i32
    %c0_i32_1 = arith.constant 0 : i32
    return %c0_i32, %c0_i32_0 : i32, i32
  }
  func.func @transform_7(%arg0: i32) -> (i32, i32) {
    %c0_i32 = arith.constant 0 : i32
    %c0_i32_0 = arith.constant 0 : i32
    %c0_i32_1 = arith.constant 0 : i32
    return %c0_i32, %c0_i32_0 : i32, i32
  }
  func.func @transform_8(%arg0: i32) -> (i32, i32, i32) {
    %c0_i32 = arith.constant 0 : i32
    %c0_i32_0 = arith.constant 0 : i32
    %c0_i32_1 = arith.constant 0 : i32
    return %arg0, %c0_i32, %c0_i32_0 : i32, i32, i32
  }
}

</mosaic_0001>

<bundles_post_ra>
// kernel: tpu_custom_call.1
= control target key start
LH: loop header
LB: loop body
LE: loop exit
PB: predicated region body
PF: predicated region fallthrough
CT: control target
= control target key end

     0   :  { %s2859_s0 = inlined_call_operand.hbm [shape: f32[2,8,32], index: 0, kind: input, shape index: {}]   ;;  %s2860_s1 = inlined_call_operand.hbm [shape: f32[2,8,32], index: 1, kind: input, shape index: {}]   ;;  %s2861_s2 = inlined_call_operand.hbm [shape: f32[2,8,32], index: 2, kind: input, shape index: {}]   ;;  %s2862_s3 = inlined_call_operand.hbm [shape: s32[2,1,8,8], index: 3, kind: input, shape index: {}]   ;;  %s2863_s4 = inlined_call_operand.hbm [shape: f32[32,32], index: 4, kind: input, shape index: {}]   ;;  %s2864_s5 = inlined_call_operand.hbm [shape: f32[32,32], index: 5, kind: input, shape index: {}]   ;;  %s2865_s6 = inlined_call_operand.hbm [shape: f32[32,32], index: 6, kind: input, shape index: {}]   ;;  %s2866_s7 = inlined_call_operand.hbm [shape: f32[32,32], index: 7, kind: input, shape index: {}]   ;;  %s2867_s8 = inlined_call_operand.hbm [shape: f32[2,8,32], index: 8, kind: output, shape index: {}]  }
   0x1   :  { %2893 = sst [smem:[#allocation29_spill]] %s2860_s1 }
   0x2   :  { %2894 = sst [smem:[#allocation30_spill]] %s2863_s4 }
   0x3   :  { %2895 = sst [smem:[#allocation31_spill]] %s2864_s5 }
   0x4   :  { %2896 = sst [smem:[#allocation32_spill]] %s2867_s8 }
   0x5   :  { %13 = vsyncpa [#allocation3], 0 }
   0x6   :  { %15 = vsyncpa [#allocation3 + $0x1], 0 }
   0x7   :  { %16 = vsyncpa [#allocation6], 0 }
   0x8   :  { %18 = vsyncpa [#allocation6 + $0x1], 0 }
   0x9   :  { %19 = vsyncpa [#allocation9], 0 }
   0xa   :  { %21 = vsyncpa [#allocation9 + $0x1], 0 }
   0xb   :  { %22 = vsyncpa [#allocation12], 0 }
   0xc   :  { %23 = vsyncpa [#allocation15], 0 }
   0xd   :  { %24 = vsyncpa [#allocation4], 0 }
   0xe   :  { %26 = vsyncpa [#allocation4 + $0x1], 0  ;;  %s2372_s27 = smov 0   ;;  %s2374_s28 = smov 0  }
   0xf   :  { %s2376_s29 = smov 0   ;;  %s2378_s30 = smov 0  }
  0x10 LB: > { %2897 = sst [smem:[#allocation24_spill]] %s2293_s27  ;;  %s2393_s9 = sadd.s32 4294967295, %s2305_s30   ;;  %s2305_s30 = sphi %s2378_s30, %s2939_s30   ;;  %s2301_s29 = sphi %s2376_s29, %s2943_s29   ;;  %s2297_s28 = sphi %s2374_s28, %s2942_s28   ;;  %s2293_s27 = sphi %s2372_s27, %s2941_s27  }
  0x11   : > { %s1669_s10 = sadd.s32 4294967294, %s2305_s30   ;;  %p52_p0 = scmp.ne.s32.totalorder %s2297_s28, %s2293_s27 }
  0x12   : > { %p2868_p1 = scmp.eq.s32.totalorder %s2393_s9, 0  ;;  %p244_p3 = scmp.eq.s32.totalorder %s1669_s10, 1 }
  0x13   : > { %p1670_p5 = scmp.ge.s32.totalorder %s2305_s30, 1  ;;  %p251_p7 = scmp.lt.s32.totalorder %s2305_s30, 3 }
  0x14   : > { %p2402_p4 = por %p2868_p1, %p52_p0  ;;  %p2407_p6 = por %p244_p3, %p52_p0 }
  0x15   : > { %p2412_p8 = pnand %p1670_p5, %p251_p7  ;;  %s2307_s14 = smov [#allocation10]  }
  0x16   : > { %s2898_s11 = scalar_select %p2402_p4, 1, 0 }
  0x17   : > { %s2899_s12 = scalar_select %p2407_p6, 1, 0 }
  0x18   : > { %s2901_s13 = scalar_select %p2412_p8, 1, 0 }
  0x19   : > { %2900 = sst [smem:[#allocation25_spill]] %s2899_s12  ;;  %s263_s15 = sshll.u32 %s2307_s14, 4  ;;  %s2416_s15 = int_to_ptr.vmem [resolvable:$true] %s263_s15 }
  0x1a   : > { %p1884_p9 = pneg %p2412_p8  ;;  %s2308_s17 = smov [#allocation11]  }
  0x1b   : > { %s276_s18 = sshll.u32 %s2308_s17, 4  ;;  %s2903_s4 = sld [smem:[#allocation30_spill]]  ;;  %s2427_s18 = int_to_ptr.vmem [resolvable:$true] %s276_s18 }
  0x1c   : > { %p2423_p11 = pnand %p1884_p9, %p2868_p1 }
  0x1e   : > { %s2902_s16 = scalar_select %p2423_p11, 1, 0 }
  0x1f   : > { %p2437_p13 = pneg %p2423_p11 }
  0x21   : > { %s1987_s21 = scalar_lea.hbm %s2903_s4, 512 }
  0x22   : > { %p1988_p12 = scmp.ne.s32.totalorder %s2903_s4, %s1987_s21  ;;  %p1994_p5 = scmp.lt.u32.totalorder %s1987_s21, %s2903_s4 }
  0x23   : > { %s2904_s24 = scalar_select %p2437_p13, 1, 0 }
  0x24   : > { %p1990_p0 = pnand %p2437_p13, %p1988_p12 }
  0x26   : > { %p1991_p3 = pneg %p1990_p0 }
  0x28   : > { %p1996_p7 = pnand %p1994_p5, %p1991_p3 }
  0x2a   : > { %1999 = shalt.err (!%p1996_p7)
}
  0x2b   : > { %s2000_s10 = scalar_lea.vmem %s2416_s15, 512  ;;  %p2008_p2 = scmp.lt.s32.totalorder %s2416_s15, %s2416_s15 }
  0x2c   : > { %p2001_p9 = scmp.ne.s32.totalorder %s2416_s15, %s2000_s10  ;;  %p2009_p6 = scmp.lt.s32.totalorder %s2000_s10, %s2000_s10 }
  0x2e   : > { %p2003_p10 = pnand %p2001_p9, %p2437_p13  ;;  %p2010_p12 = por %p2009_p6, %p2008_p2 }
  0x30   : > { %p2004_p1 = pneg %p2003_p10 }
  0x32   : > { %p2011_p0 = pnand %p2010_p12, %p2004_p1 }
  0x34   : > { %2014 = shalt.err (!%p2011_p0)
}
  0x35   : > { %s2871_s14 = smov 128   ;;  %s2873_s17 = smov 8  }
  0x36   : > { %1887 = dma.hbm_to_vmem [thread:$0]  (!%p2423_p11), %s2903_s4, 512, %s2416_s15, [#allocation9], %s2871_s14, %s2871_s14, %s2873_s17  }
  0x37   : > { %s2905_s5 = sld [smem:[#allocation31_spill]] }
  0x3d   : > { %s2015_s23 = scalar_lea.hbm %s2905_s5, 512 }
  0x3e   : > { %p2016_p1 = scmp.ne.s32.totalorder %s2905_s5, %s2015_s23  ;;  %p2022_p10 = scmp.lt.u32.totalorder %s2015_s23, %s2905_s5 }
  0x40   : > { %p2018_p2 = pnand %p2016_p1, %p2437_p13 }
  0x42   : > { %p2019_p6 = pneg %p2018_p2 }
  0x44   : > { %p2024_p3 = pnand %p2022_p10, %p2019_p6 }
  0x46   : > { %2027 = shalt.err (!%p2024_p3)
}
  0x47   : > { %s2028_s15 = scalar_lea.vmem %s2427_s18, 512  ;;  %p2036_p12 = scmp.lt.s32.totalorder %s2427_s18, %s2427_s18 }
  0x48   : > { %p2029_p5 = scmp.ne.s32.totalorder %s2427_s18, %s2028_s15  ;;  %p2037_p0 = scmp.lt.s32.totalorder %s2028_s15, %s2028_s15 }
  0x4a   : > { %p2031_p7 = pnand %p2029_p5, %p2437_p13  ;;  %p2038_p1 = por %p2037_p0, %p2036_p12 }
  0x4c   : > { %p2032_p9 = pneg %p2031_p7 }
  0x4e   : > { %p2039_p2 = pnand %p2038_p1, %p2032_p9 }
  0x50   : > { %2042 = shalt.err (!%p2039_p2)
}
  0x51   : > { %1890 = dma.hbm_to_vmem [thread:$0]  (!%p2423_p11), %s2905_s5, 512, %s2427_s18, [#allocation12], %s2871_s14, %s2871_s14, %s2873_s17  }
  0x52   : > { %s2488_s20 = sadd.s32 1, %s2305_s30   ;;  %s39_s21 = sadd.s32 1, %s2301_s29 }
  0x53   : > { %2906 = sst [smem:[#allocation26_spill]] %s2488_s20  ;;  %s36_s22 = ssub.s32 %s2305_s30, %s2488_s20 }
  0x54   : > { %p46_p6 = scmp.ne.s32.totalorder %s2301_s29, %s2297_s28  ;;  %p37_p10 = scmp.eq.s32.totalorder %s36_s22, 0 }
  0x55   : > { %p47_p3 = scmp.eq.s32.totalorder %s2305_s30, 0  ;;  %p2907_p5 = scmp.eq.s32.totalorder %s2393_s9, 1 }
  0x56   : > { %p1918_p9 = scmp.lt.s32.totalorder %s2305_s30, 2  ;;  %s2870_s26 = sand.u32 1, %s2301_s29  }
  0x57   : > { %p2498_p7 = por %p2907_p5, %p46_p6  ;;  %p48_p12 = por %p47_p3, %p46_p6 }
  0x58   : > { %s2504_s25 = scalar_select %p37_p10, %s2301_s29, %s39_s21  }
  0x59   : > { %s2908_s23 = scalar_select %p2498_p7, 1, 0 }
  0x5a   : > { %2910 = sst [smem:[#allocation28_spill]] %s2504_s25  ;;  %s2509_s18 = sshll.u32 %s2870_s26, 3 }
  0x5b   : > { %2909 = sst [smem:[#allocation27_spill]] %s2908_s23  ;;  %s2512_s10 = sshll.u32 %s2305_s30, 7 }
  0x5c   : > { %p2514_p0 = pnand %p1918_p9, %p48_p12  ;;  %s2879_s12 = sand.u32 1, %s2305_s30  }
  0x5d   : > { %s2912_s1 = sld [smem:[#allocation29_spill]]  ;;  %s338_s26 = scalar_lea.vmem [#allocation5], %s2509_s18 }
  0x5e   : > { %s2911_s15 = scalar_select %p2514_p0, 1, 0 }
  0x5f   : > { %s345_s14 = sshll.u32 %s338_s26, 4  ;;  %s2530_s17 = scalar_lea.sflag [#allocation6], %s2879_s12  ;;  %s2526_s14 = int_to_ptr.vmem [resolvable:$true] %s345_s14 }
  0x60   : > { %p2536_p2 = pneg %p2514_p0 }
  0x62   : > { %s2913_s5 = scalar_select %p2536_p2, 1, 0 }
  0x63   : > { %s2523_s21 = scalar_lea.hbm %s2912_s1, %s2512_s10  ;;  %s2048_s26 = scalar_lea.hbm %s2912_s1, 256 }
  0x64   : > { %s2043_s4 = scalar_lea.hbm %s2523_s21, 128  ;;  %p2049_p3 = scmp.lt.u32.totalorder %s2523_s21, %s2912_s1 }
  0x65   : > { %p2044_p1 = scmp.ne.s32.totalorder %s2523_s21, %s2043_s4  ;;  %p2050_p5 = scmp.lt.u32.totalorder %s2048_s26, %s2043_s4 }
  0x66   : > { %p2052_p12 = scmp.lt.u32.totalorder %s2043_s4, %s2523_s21 }
  0x67   : > { %p2046_p6 = pnand %p2536_p2, %p2044_p1  ;;  %p2051_p9 = por %p2050_p5, %p2049_p3 }
  0x69   : > { %p2047_p10 = pneg %p2046_p6  ;;  %p2053_p7 = por %p2052_p12, %p2051_p9 }
  0x6b   : > { %p2054_p4 = pnand %p2053_p7, %p2047_p10 }
  0x6d   : > { %2057 = shalt.err (!%p2054_p4)
}
  0x6e   : > { %s2058_s12 = scalar_lea.vmem %s2526_s14, 128  ;;  %s2311_s19 = smov [#allocation5]  }
  0x6f   : > { %p2059_p1 = scmp.ne.s32.totalorder %s2526_s14, %s2058_s12  ;;  %s2063_s22 = sshll.u32 %s2311_s19, 4  ;;  %s2064_s22 = int_to_ptr.vmem [resolvable:$false] %s2063_s22 }
  0x70   : > { %s2065_s20 = scalar_lea.vmem %s2064_s22, 256  ;;  %p2066_p11 = scmp.lt.s32.totalorder %s2526_s14, %s2064_s22 }
  0x71   : > { %p2061_p6 = pnand %p2059_p1, %p2536_p2  ;;  %p2067_p13 = scmp.lt.s32.totalorder %s2065_s20, %s2058_s12 }
  0x73   : > { %p2062_p8 = pneg %p2061_p6  ;;  %p2068_p3 = por %p2067_p13, %p2066_p11 }
  0x75   : > { %p2069_p5 = pnand %p2068_p3, %p2062_p8 }
  0x77   : > { %2072 = shalt.err (!%p2069_p5)
}
  0x78   : > { %1903 = dma.hbm_to_vmem [thread:$0]  (!%p2514_p0), %s2523_s21, 128, %s2526_s14, %s2530_s17  }
  0x79   : > { %s2312_s4 = smov [#allocation13]   ;;  %s2313_s26 = smov [#allocation14]  }
  0x7a   : > { %s289_s25 = sshll.u32 %s2312_s4, 4  ;;  %s302_s1 = sshll.u32 %s2313_s26, 4  ;;  %s290_s25 = int_to_ptr.vmem [resolvable:$true] %s289_s25  ;;  %s303_s1 = int_to_ptr.vmem [resolvable:$true] %s302_s1 }
  0x7b   : > { %s2073_s22 = scalar_lea.hbm %s2865_s6, 512  ;;  %p2914_p8 = scmp.ne.s32.totalorder %s2904_s24, 0 }
  0x7c   : > { %p2074_p4 = scmp.ne.s32.totalorder %s2865_s6, %s2073_s22  ;;  %p2080_p7 = scmp.lt.u32.totalorder %s2073_s22, %s2865_s6 }
  0x7e   : > { %p2076_p11 = pnand %p2074_p4, %p2914_p8 }
  0x80   : > { %p2077_p13 = pneg %p2076_p11 }
  0x82   : > { %p2082_p10 = pnand %p2080_p7, %p2077_p13 }
  0x84   : > { %2085 = shalt.err (!%p2082_p10)
}
  0x85   : > { %s2086_s14 = scalar_lea.vmem %s290_s25, 512  ;;  %p2094_p6 = scmp.lt.s32.totalorder %s290_s25, %s290_s25 }
  0x86   : > { %p2087_p9 = scmp.ne.s32.totalorder %s290_s25, %s2086_s14  ;;  %p2095_p3 = scmp.lt.s32.totalorder %s2086_s14, %s2086_s14 }
  0x88   : > { %p2089_p12 = pnand %p2087_p9, %p2914_p8  ;;  %p2096_p5 = por %p2095_p3, %p2094_p6 }
  0x8a   : > { %p2090_p1 = pneg %p2089_p12 }
  0x8c   : > { %p2097_p0 = pnand %p2096_p5, %p2090_p1 }
  0x8e   : > { %2100 = shalt.err (!%p2097_p0)
}
  0x8f   : > { %p2915_p4 = scmp.ne.s32.totalorder %s2902_s16, 0  ;;  %s2916_s27 = smov 8  }
  0x90   : > { %s2917_s21 = smov 128   ;;  %s2101_s19 = scalar_lea.hbm %s2866_s7, 512 }
  0x91   : > { %1893 = dma.hbm_to_vmem [thread:$0]  (!%p2915_p4), %s2865_s6, 512, %s290_s25, [#allocation12], %s2917_s21, %s2917_s21, %s2916_s27  }
  0x92   : > { %p2102_p11 = scmp.ne.s32.totalorder %s2866_s7, %s2101_s19  ;;  %p2108_p7 = scmp.lt.u32.totalorder %s2101_s19, %s2866_s7 }
  0x94   : > { %p2104_p0 = pnand %p2102_p11, %p2914_p8 }
  0x96   : > { %p2105_p13 = pneg %p2104_p0 }
  0x98   : > { %p2110_p10 = pnand %p2108_p7, %p2105_p13 }
  0x9a   : > { %2113 = shalt.err (!%p2110_p10)
}
  0x9b   : > { %s2114_s8 = scalar_lea.vmem %s303_s1, 512  ;;  %p2122_p6 = scmp.lt.s32.totalorder %s303_s1, %s303_s1 }
  0x9c   : > { %p2115_p9 = scmp.ne.s32.totalorder %s303_s1, %s2114_s8  ;;  %p2123_p3 = scmp.lt.s32.totalorder %s2114_s8, %s2114_s8 }
  0x9e   : > { %p2117_p12 = pnand %p2115_p9, %p2914_p8  ;;  %p2124_p5 = por %p2123_p3, %p2122_p6 }
  0xa0   : > { %p2118_p1 = pneg %p2117_p12 }
  0xa2   : > { %p2125_p2 = pnand %p2124_p5, %p2118_p1 }
  0xa4   : > { %2128 = shalt.err (!%p2125_p2)
}
  0xa5   : > { %1896 = dma.hbm_to_vmem [thread:$0]  (!%p2915_p4), %s2866_s7, 512, %s303_s1, [#allocation15], %s2917_s21, %s2917_s21, %s2916_s27  }
  0xa6   : > { %s2606_s26 = scalar_lea.hbm %s2859_s0, %s2512_s10  ;;  %s320_s16 = scalar_lea.vmem [#allocation2], %s2509_s18 }
  0xa7   : > { %s327_s19 = sshll.u32 %s320_s16, 4  ;;  %s2615_s20 = scalar_lea.hbm %s2861_s2, %s2512_s10  ;;  %s2609_s19 = int_to_ptr.vmem [resolvable:$true] %s327_s19 }
  0xa8   : > { %s2918_s14 = sand.u32 1, %s2301_s29   ;;  %s2129_s27 = scalar_lea.hbm %s2606_s26, 128 }
  0xa9   : > { %s317_s1 = scalar_lea.sflag [#allocation3], %s2918_s14  ;;  %p2130_p2 = scmp.ne.s32.totalorder %s2606_s26, %s2129_s27 }
  0xaa   : > { %p2919_p8 = scmp.ne.s32.totalorder %s2913_s5, 0  ;;  %s2134_s25 = scalar_lea.hbm %s2859_s0, 256 }
  0xab   : > { %p2135_p0 = scmp.lt.u32.totalorder %s2606_s26, %s2859_s0  ;;  %p2136_p13 = scmp.lt.u32.totalorder %s2134_s25, %s2129_s27 }
  0xac   : > { %p2132_p4 = pnand %p2130_p2, %p2919_p8  ;;  %p2138_p10 = scmp.lt.u32.totalorder %s2129_s27, %s2606_s26 }
  0xad   : > { %p2137_p7 = por %p2136_p13, %p2135_p0 }
  0xae   : > { %p2133_p11 = pneg %p2132_p4 }
  0xaf   : > { %p2139_p9 = por %p2138_p10, %p2137_p7 }
  0xb1   : > { %p2140_p12 = pnand %p2139_p9, %p2133_p11 }
  0xb3   : > { %2143 = shalt.err (!%p2140_p12)
}
  0xb4   : > { %s2144_s4 = scalar_lea.vmem %s2609_s19, 128  ;;  %s2314_s16 = smov [#allocation2]  }
  0xb5   : > { %p2145_p1 = scmp.ne.s32.totalorder %s2609_s19, %s2144_s4  ;;  %s2149_s22 = sshll.u32 %s2314_s16, 4  ;;  %s2150_s22 = int_to_ptr.vmem [resolvable:$false] %s2149_s22 }
  0xb6   : > { %s2151_s12 = scalar_lea.vmem %s2150_s22, 256  ;;  %p2152_p5 = scmp.lt.s32.totalorder %s2609_s19, %s2150_s22 }
  0xb7   : > { %p2147_p6 = pnand %p2145_p1, %p2919_p8  ;;  %p2153_p2 = scmp.lt.s32.totalorder %s2151_s12, %s2144_s4 }
  0xb9   : > { %p2148_p3 = pneg %p2147_p6  ;;  %p2154_p4 = por %p2153_p2, %p2152_p5 }
  0xbb   : > { %p2155_p0 = pnand %p2154_p4, %p2148_p3 }
  0xbd   : > { %2158 = shalt.err (!%p2155_p0)
}
  0xbe   : > { %p2920_p11 = scmp.ne.s32.totalorder %s2911_s15, 0  ;;  %s356_s14 = scalar_lea.vmem [#allocation7], %s2509_s18 }
  0xbf   : > { %s363_s27 = sshll.u32 %s356_s14, 4  ;;  %s2645_s25 = scalar_lea.hbm %s2862_s3, %s2512_s10  ;;  %s364_s27 = int_to_ptr.vmem [resolvable:$true] %s363_s27 }
  0xc0   : > { %1900 = dma.hbm_to_vmem [thread:$0]  (!%p2920_p11), %s2606_s26, 128, %s2609_s19, %s317_s1  }
  0xc1   : > { %s2159_s23 = scalar_lea.hbm %s2615_s20, 128  ;;  %s2164_s16 = scalar_lea.hbm %s2861_s2, 256 }
  0xc2   : > { %p2160_p13 = scmp.ne.s32.totalorder %s2615_s20, %s2159_s23  ;;  %p2165_p9 = scmp.lt.u32.totalorder %s2615_s20, %s2861_s2 }
  0xc3   : > { %p2166_p12 = scmp.lt.u32.totalorder %s2164_s16, %s2159_s23  ;;  %p2168_p6 = scmp.lt.u32.totalorder %s2159_s23, %s2615_s20 }
  0xc4   : > { %p2162_p7 = pnand %p2160_p13, %p2919_p8 }
  0xc5   : > { %p2167_p1 = por %p2166_p12, %p2165_p9 }
  0xc6   : > { %p2163_p10 = pneg %p2162_p7 }
  0xc7   : > { %p2169_p3 = por %p2168_p6, %p2167_p1 }
  0xc9   : > { %p2170_p5 = pnand %p2169_p3, %p2163_p10 }
  0xcb   : > { %2173 = shalt.err (!%p2170_p5)
}
  0xcc   : > { %s2174_s10 = scalar_lea.vmem %s364_s27, 128  ;;  %s2315_s26 = smov [#allocation7]  }
  0xcd   : > { %p2175_p2 = scmp.ne.s32.totalorder %s364_s27, %s2174_s10  ;;  %s2179_s19 = sshll.u32 %s2315_s26, 4  ;;  %s2180_s19 = int_to_ptr.vmem [resolvable:$false] %s2179_s19 }
  0xce   : > { %s2181_s1 = scalar_lea.vmem %s2180_s19, 256  ;;  %p2182_p13 = scmp.lt.s32.totalorder %s364_s27, %s2180_s19 }
  0xcf   : > { %p2177_p4 = pnand %p2175_p2, %p2919_p8  ;;  %p2183_p7 = scmp.lt.s32.totalorder %s2181_s1, %s2174_s10 }
  0xd1   : > { %p2178_p0 = pneg %p2177_p4  ;;  %p2184_p11 = por %p2183_p7, %p2182_p13 }
  0xd3   : > { %p2185_p9 = pnand %p2184_p11, %p2178_p0 }
  0xd5   : > { %2188 = shalt.err (!%p2185_p9)
}
  0xd6   : > { %p2921_p12 = scmp.ne.s32.totalorder %s2911_s15, 0  ;;  %s374_s14 = scalar_lea.vmem [#allocation8], %s2509_s18 }
  0xd7   : > { %s381_s21 = sshll.u32 %s374_s14, 4  ;;  %s2922_s8 = sand.u32 1, %s2305_s30   ;;  %s382_s21 = int_to_ptr.vmem [resolvable:$true] %s381_s21 }
  0xd8   : > { %1906 = dma.hbm_to_vmem [thread:$0]  (!%p2921_p12), %s2615_s20, 128, %s364_s27, %s2530_s17  }
  0xd9   : > { %s371_s23 = scalar_lea.sflag [#allocation9], %s2922_s8  ;;  %s2189_s24 = scalar_lea.hbm %s2645_s25, 128 }
  0xda   : > { %p2190_p11 = scmp.ne.s32.totalorder %s2645_s25, %s2189_s24  ;;  %s2194_s22 = scalar_lea.hbm %s2862_s3, 256 }
  0xdb   : > { %p2195_p6 = scmp.lt.u32.totalorder %s2645_s25, %s2862_s3  ;;  %p2196_p3 = scmp.lt.u32.totalorder %s2194_s22, %s2189_s24 }
  0xdc   : > { %p2192_p10 = pnand %p2190_p11, %p2919_p8  ;;  %p2198_p2 = scmp.lt.u32.totalorder %s2189_s24, %s2645_s25 }
  0xdd   : > { %p2197_p5 = por %p2196_p3, %p2195_p6 }
  0xde   : > { %p2193_p1 = pneg %p2192_p10 }
  0xdf   : > { %p2199_p4 = por %p2198_p2, %p2197_p5 }
  0xe1   : > { %p2200_p0 = pnand %p2199_p4, %p2193_p1 }
  0xe3   : > { %2203 = shalt.err (!%p2200_p0)
}
  0xe4   : > { %s2204_s17 = scalar_lea.vmem %s382_s21, 128  ;;  %s2316_s18 = smov [#allocation8]  }
  0xe5   : > { %p2205_p13 = scmp.ne.s32.totalorder %s382_s21, %s2204_s17  ;;  %s2209_s20 = sshll.u32 %s2316_s18, 4  ;;  %s2210_s20 = int_to_ptr.vmem [resolvable:$false] %s2209_s20 }
  0xe6   : > { %s2211_s27 = scalar_lea.vmem %s2210_s20, 256  ;;  %p2212_p11 = scmp.lt.s32.totalorder %s382_s21, %s2210_s20 }
  0xe7   : > { %p2207_p7 = pnand %p2205_p13, %p2919_p8  ;;  %p2213_p10 = scmp.lt.s32.totalorder %s2211_s27, %s2204_s17 }
  0xe9   : > { %p2208_p9 = pneg %p2207_p7  ;;  %p2214_p12 = por %p2213_p10, %p2212_p11 }
  0xeb   : > { %p2215_p3 = pnand %p2214_p12, %p2208_p9 }
  0xed   : > { %2218 = shalt.err (!%p2215_p3)
}
  0xee   : > { %p2923_p6 = scmp.ne.s32.totalorder %s2911_s15, 0  ;;  %p2924_p1 = scmp.ne.s32.totalorder %s2901_s13, 0 }
  0xef   : > { %s2688_s5 = sand.u32 (!%p2924_p1), 1, %s2297_s28   ;;  %p2925_p8 = scmp.ne.s32.totalorder (!%p2924_p1), %s2898_s11, 0 }
  0xf0   : > { %1909 = dma.hbm_to_vmem [thread:$0]  (!%p2923_p6), %s2645_s25, 128, %s382_s21, %s371_s23  }
  0xf1   : > { %390 = sbr.rel (%p2924_p1) target bundleno = 1801 (0x709), region = 52  ;;  %s2691_s26 = sshll.u32 (!%p2924_p1), %s2688_s5, 3 }
  0xf2   : > { %s393_s19 = scalar_lea.sflag (!%p2924_p1), [#allocation3], %s2688_s5  ;;  %s396_s1 = scalar_lea.vmem (!%p2924_p1), [#allocation2], %s2691_s26 }
  0xf8   : > { %2264 = dma.done.wait (%p2925_p8), %s393_s19, 128  }
  0xf9   : > { %2266 = vsyncadd (%p2925_p8), %s393_s19, 4294967168  ;;  %s401_s13 = sand.u32 1, %s2393_s9   ;;  %s405_s25 = scalar_lea.vmem [#allocation5], %s2691_s26 }
  0xfa   : > { %s402_s15 = scalar_lea.sflag [#allocation6], %s401_s13 }
  0xfb   : > { %2268 = dma.done.wait (%p2925_p8), %s402_s15, 256  }
  0xfc   : > { %2270 = vsyncadd (%p2925_p8), %s402_s15, 4294967040  ;;  %s414_s14 = scalar_lea.vmem [#allocation7], %s2691_s26  ;;  %s420_s21 = scalar_lea.sflag [#allocation9], %s401_s13 }
  0xfd   : > { %s423_s8 = scalar_lea.vmem [#allocation8], %s2691_s26 }
  0xfe   : > { %2272 = dma.done.wait (%p2925_p8), %s420_s21, 128  }
  0xff   : > { %2274 = vsyncadd (%p2925_p8), %s420_s21, 4294967168  ;;  %p2926_p12 = scmp.eq.s32.totalorder %s2393_s9, 0 }
 0x101   : > { %2276 = dma.done.wait (%p2926_p12), [#allocation9], 512   ;;  %p2927_p5 = pmov %p2926_p12 }
 0x103   : > { %2278 = vsyncadd (%p2927_p5), [#allocation9], 4294966784  ;;  %p2928_p2 = pmov %p2927_p5 }
 0x105   : > { %2280 = dma.done.wait (%p2928_p2), [#allocation12], 1024   ;;  %p2929_p4 = pmov %p2928_p2 }
 0x106   : > { %p2930_p0 = pmov %p2928_p2 }
 0x107   : > { %2282 = vsyncadd (%p2929_p4), [#allocation12], 4294966272 }
 0x108   : > { %2284 = dma.done.wait (%p2930_p0), [#allocation15], 512   ;;  %p2931_p13 = pmov %p2930_p0 }
 0x109   : > { %v2317_v0 = vmov 0.0|0.0   ;;  %vm2318_vm0 = vmmov 0   ;;  %v2319_v1 = vmov 0.0   ;;  %v488_v2 = vld [vmem:[#allocation10] sm:$0xff]  ;;  %v489_v3 = vld [vmem:[#allocation10 + $0x8] sm:$0xff]  ;;  %v490_v7 = vld [vmem:[#allocation10 + $0x10] sm:$0xff] }
 0x10a   : > { %2286 = vsyncadd (%p2931_p13), [#allocation15], 4294966784  ;;  %1834 = vmatprep.subr.bf16.mxu0 %v2317_v0  ;;  %1840 = vmatprep.subr.bf16.mxu1 %v2317_v0  ;;  %v568_v4 = vld [vmem:[#allocation11] sm:$0xff]  ;;  %v1835_v5 = vpack.c.bf16 %v489_v3, %v488_v2  ;;  %v569_v6 = vld [vmem:[#allocation11 + $0x8] sm:$0xff]  ;;  %vm492_vm1 = vcmask 261120   ;;  %vm724_vm2 = vcmask 64512  }
 0x10b   : > { %1758 = vmatprep.mubr.msk.f32.mxu0 %vm2318_vm0, %v2319_v1  ;;  %1769 = vmatprep.mubr.msk.f32.mxu1 %vm2318_vm0, %v2319_v1  ;;  %v491_v8 = vld [vmem:[#allocation10 + $0x18] sm:$0xff]  ;;  %v1841_v9 = vpack.c.bf16 %v569_v6, %v568_v4  ;;  %v570_v10 = vld [vmem:[#allocation11 + $0x10] sm:$0xff]  ;;  %v487_v14 = vld [vmem:[%s396_s1] sm:$0xff]  ;;  %s2320_s11 = smov 120   ;;  %s2321_s23 = smov 112   ;;  %vm1399_vm4 = vcmask 130048  }
 0x10c   : > { %v571_v11 = vld [vmem:[#allocation11 + $0x18] sm:$0xff]  ;;  %1836 = vmatpush3.bf16.msra.mxu0 %v1835_v5  ;;  %v1838_v12 = vpack.c.bf16 %v491_v8, %v490_v7  ;;  %v646_v16 = vld [vmem:[#allocation13] sm:$0xff]  ;;  %v647_v17 = vld [vmem:[#allocation13 + $0x8] sm:$0xff]  ;;  %s2322_s24 = smov 104   ;;  %s2323_s4 = smov 8   ;;  %vm1401_vm5 = vcmask 195584  }
 0x10d   : > { %1842 = vmatpush3.bf16.msra.mxu1 %v1841_v9  ;;  %1837 = vmatprep.subr.bf16.mxu0 %v2317_v0  ;;  %v1844_v13 = vpack.c.bf16 %v571_v11, %v570_v10  ;;  %v567_v15 = vld [vmem:[%s405_s25] sm:$0xff]  ;;  %v1847_v19 = vpack.c.bf16 %v647_v17, %v646_v16  ;;  %v645_v22 = vld [vmem:[%s414_s14] sm:$0xff]  ;;  %s2324_s16 = smov 16   ;;  %s2325_s22 = smov 24  }
 0x10e   : > { %1843 = vmatprep.subr.bf16.mxu1 %v2317_v0  ;;  %v648_v18 = vld [vmem:[#allocation13 + $0x10] sm:$0xff]  ;;  %v649_v20 = vld [vmem:[#allocation13 + $0x18] sm:$0xff]  ;;  %v1403_v17 = vld [vmem:[#allocation14] sm:$0xff]  ;;  %s2932_s12 = sld [smem:[#allocation27_spill]]  ;;  %s1711_s10 = sshll.u32 %s2393_s9, 7 }
 0x10f   : > { %v1850_v21 = vpack.c.bf16 %v649_v20, %v648_v18  ;;  %v723_v35 = vld [vmem:[%s423_s8] sm:$0xff]  ;;  %v1404_v18 = vld [vmem:[#allocation14 + $0x8] sm:$0xff]  ;;  %s486_s17 = scalar_lea.vmem [#allocation16], %s2691_s26  ;;  %s2933_s19 = sld [smem:[#allocation32_spill]] }
 0x110   : > { %1839 = vmatpush3.bf16.msra.mxu0 %v1838_v12  ;;  %vm801_vm3 = vcmp.eq.s32.totalorder %v723_v35, 0  ;;  %v1853_v20 = vpack.c.bf16 %v1404_v18, %v1403_v17  ;;  %s1495_s18 = sshll.u32 %s486_s17, 4  ;;  %s1482_s13 = scalar_lea.sflag [#allocation4], %s2688_s5  ;;  %s2816_s18 = int_to_ptr.vmem [resolvable:$true] %s1495_s18 }
 0x111   : > { %1845 = vmatpush3.bf16.msra.mxu1 %v1844_v13  ;;  %1846 = vmatprep.subr.bf16.mxu0 %v2317_v0  ;;  %s2219_s15 = scalar_lea.vmem %s2816_s18, 128  ;;  %s2326_s9 = smov [#allocation16]  }
 0x112   : > { %1783 = vmatprep.subr.mxu1 %v2319_v1  ;;  %p2220_p7 = scmp.ne.s32.totalorder %s2816_s18, %s2219_s15  ;;  %s2223_s26 = sshll.u32 %s2326_s9, 4  ;;  %s2224_s26 = int_to_ptr.vmem [resolvable:$false] %s2223_s26 }
 0x113   : > { %1759 = vmatmul.mubr.msk.f32.vlgmr.msra.gmra.mrb[0].mxu0 %vm492_vm1, %v487_v14  ;;  %s2225_s25 = scalar_lea.vmem %s2224_s26, 256  ;;  %p2226_p3 = scmp.lt.s32.totalorder %s2816_s18, %s2224_s26 }
 0x114   : > { %1770 = vmatmul.mubr.msk.f32.vlgmr.msra.gmra.mrb[0].mxu1 %vm492_vm1, %v567_v15  ;;  %1780 = vmatprep.mubr.msk.f32.mxu0 %vm2318_vm0, %v2319_v1  ;;  %p2934_p9 = scmp.ne.s32.totalorder %s2932_s12, 0  ;;  %p2227_p6 = scmp.lt.s32.totalorder %s2225_s25, %s2219_s15 }
 0x115   : > { %1785 = vmatprep.mubr.msk.f32.mxu1 %vm2318_vm0, %v2319_v1  ;;  %1848 = vmatpush3.bf16.msra.mxu0 %v1847_v19  ;;  %s2814_s1 = scalar_lea.hbm %s2933_s19, %s1711_s10 }
 0x116   : > { %1849 = vmatprep.subr.bf16.mxu0 %v2317_v0  ;;  %p2221_p11 = pnand %p2220_p7, %p2934_p9  ;;  %p2228_p1 = por %p2227_p6, %p2226_p3 }
 0x118   : > { %p2222_p10 = pneg %p2221_p11 }
 0x119   : > { %1851 = vmatpush3.bf16.msra.mxu0 %v1850_v21  ;;  %v1405_v21 = vld [vmem:[#allocation14 + $0x10] sm:$0xff] }
 0x11a   : > { %1803 = vmatprep.subr.mxu0 %v2319_v1  ;;  %p2229_p8 = pnand %p2228_p1, %p2222_p10 }
 0x11c   : > { %1781 = vmatmul.mubr.msk.f32.vlgmr.msra.gmra.mrb[2].mxu0 %vm492_vm1, %v645_v22  ;;  %v1406_v22 = vld [vmem:[#allocation14 + $0x18] sm:$0xff] }
 0x11d   : > { %1805 = vmatprep.mubr.msk.f32.mxu0 %vm2318_vm0, %v2319_v1 }
 0x1e6   : > { %v562_v23 = vpop.f32.mrb[0].mxu0 }
 0x1e7   : > { %v566_v24 = vmul.f32 0.35355338, %v562_v23  ;;  %v641_v25 = vpop.f32.mrb[0].mxu1  ;;  %v1760_v26 = vpop.f32.mrb[1].mxu0 }
 0x1e8   : > { %v1771_v27 = vpop.f32.mrb[1].mxu1  ;;  %1784 = vmatpush3.xpose.msk.msra.mxu1 %vm724_vm2, %v641_v25 }
 0x1e9   : > { %887 = vrot.lane.b32.xlu1 %v566_v24, %s2320_s11  ;;  %1788 = vmatprep.subr.mxu1 %v2319_v1 }
 0x1eb   : > { %1786 = vmatmul.mubr.msk.f32.vlgmr.msra.gmra.mrb[2].mxu1 %vm724_vm2, %v566_v24 }
 0x1ec   : > { %1790 = vmatprep.mubr.msk.f32.mxu1 %vm2318_vm0, %v2319_v1 }
 0x1ed   : > { %1056 = vrot.lane.b32.xlu1 %v641_v25, %s2321_s23 }
 0x1ef   : > { %v719_v28 = vpop.f32.mrb[2].mxu0 }
 0x1f0   : > { %v1782_v29 = vpop.f32.mrb[3].mxu0  ;;  %1789 = vmatpush3.msra.mxu1 %v719_v28 }
 0x1f1   : > { %1054 = vrot.lane.b32.xlu1 %v566_v24, %s2321_s23  ;;  %1793 = vmatprep.subr.mxu1 %v2319_v1 }
 0x1f5   : > { %1222 = vrot.lane.b32.xlu1 %v641_v25, %s2322_s24 }
 0x1f9   : > { %1220 = vrot.lane.b32.xlu1 %v566_v24, %s2322_s24  ;;  %v1856_v24 = vpack.c.bf16 %v1406_v22, %v1405_v21 }
 0x1fd   : > { %1142 = vrot.lane.b32.xlu1 %v719_v28, %s2321_s23 }
 0x25b   : > { %v888_v30 = vpop.permute.xlu1 %887 }
 0x25f   : > { %v1057_v31 = vpop.permute.xlu1 %1056 }
 0x260   : > { %1804 = vmatpush3.xpose.msk.msra.mxu0 %vm724_vm2, %v1057_v31 }
 0x261   : > { %1813 = vmatprep.subr.mxu0 %v2319_v1 }
 0x263   : > { %v1055_v32 = vpop.permute.xlu1 %1054 }
 0x264   : > { %1806 = vmatmul.mubr.msk.f32.vlgmr.msra.gmra.mrb[4].mxu0 %vm724_vm2, %v1055_v32 }
 0x265   : > { %1815 = vmatprep.mubr.msk.f32.mxu0 %vm2318_vm0, %v2319_v1 }
 0x267   : > { %v1223_v33 = vpop.permute.xlu1 %1222 }
 0x268   : > { %1814 = vmatpush3.xpose.msk.msra.mxu0 %vm724_vm2, %v1223_v33 }
 0x269   : > { %1852 = vmatprep.subr.bf16.mxu0 %v2317_v0 }
 0x26b   : > { %v1221_v34 = vpop.permute.xlu1 %1220 }
 0x26c   : > { %1816 = vmatmul.mubr.msk.f32.vlgmr.msra.gmra.mrb[6].mxu0 %vm724_vm2, %v1221_v34 }
 0x26d   : > { %1831 = vmatprep.mubr.msk.f32.mxu0 %vm2318_vm0, %v2319_v1  ;;  %1854 = vmatpush3.bf16.msra.mxu0 %v1853_v20 }
 0x26e   : > { %1855 = vmatprep.subr.bf16.mxu0 %v2317_v0 }
 0x26f   : > { %v1143_v3 = vpop.permute.xlu1 %1142 }
 0x271   : > { %1857 = vmatpush3.bf16.msra.mxu0 %v1856_v24 }
 0x2be   : > { %v797_v36 = vpop.f32.mrb[2].mxu1 }
 0x2bf   : > { %v802_v37 = vsel %vm801_vm3, -1e+09, %v797_v36  ;;  %v1787_v38 = vpop.f32.mrb[3].mxu1 }
 0x2c0   : > { %v803_v39 = vsel %vm724_vm2, %v802_v37, -inf }
 0x2c1   : > { %804 = vmax.xlane.f32.xlu0 %v803_v39 }
 0x2d7   : > { %889 = vrot.lane.b32.xlu0 %v641_v25, %s2320_s11 }
 0x337   : > { %v1128_v40 = vpop.f32.mrb[4].mxu0 }
 0x338   : > { %v1132_v41 = vsel %vm801_vm3, -1e+09, %v1128_v40  ;;  %v1807_v42 = vpop.f32.mrb[5].mxu0 }
 0x339   : > { %v1133_v43 = vsel %vm724_vm2, %v1132_v41, -inf }
 0x33a   : > { %1134 = vmax.xlane.f32.xlu0 %v1133_v43 }
 0x33f   : > { %v1294_v44 = vpop.f32.mrb[6].mxu0 }
 0x340   : > { %v1298_v45 = vsel %vm801_vm3, -1e+09, %v1294_v44  ;;  %v1817_v46 = vpop.f32.mrb[7].mxu0 }
 0x341   : > { %v1299_v47 = vsel %vm724_vm2, %v1298_v45, -inf }
 0x342   : > { %1300 = vmax.xlane.f32.xlu1 %v1299_v47 }
 0x34e   : > { %v805_v48 = vpop.xlane.xlu0 %804 }
 0x34f   : > { %v806_v49 = vsub.f32 %v802_v37, %v805_v48 }
 0x350   : > { %976 = vrot.lane.b32.xlu0 %v719_v28, %s2320_s11 }
 0x351   : > { %v807_v50 = vmul.f32 1.442695, %v806_v49 }
 0x352   : > { %v890_v52 = vpop.permute.xlu0 %889 }
 0x353   : > { %1971 = vpow2.f32 %v807_v50 }
 0x35d   : > { %v1972_v51 = vpop.eup %1971 }
 0x35e   : > { %1791 = vmatmul.mubr.msk.f32.vlgmr.msra.gmra.mrb[4].mxu1 %vm724_vm2, %v1972_v51  ;;  %v809_v15 = vsel %vm724_vm2, %v1972_v51, 0.0 }
 0x35f   : > { %1794 = vmatpush3.xpose.msk.msra.mxu1 %vm724_vm2, %v890_v52  ;;  %1795 = vmatprep.mubr.msk.f32.mxu1 %vm2318_vm0, %v2319_v1 }
 0x360   : > { %1798 = vmatprep.subr.mxu1 %v2319_v1 }
 0x362   : > { %1796 = vmatmul.mubr.msk.f32.vlgmr.msra.gmra.mrb[6].mxu1 %vm724_vm2, %v888_v30 }
 0x363   : > { %1800 = vmatprep.mubr.msk.f32.mxu1 %vm2318_vm0, %v2319_v1 }
 0x3c7   : > { %v1135_v53 = vpop.xlane.xlu0 %1134 }
 0x3c8   : > { %v1136_v61 = vsub.f32 %v1132_v41, %v1135_v53 }
 0x3ca   : > { %v1137_v62 = vmul.f32 1.442695, %v1136_v61 }
 0x3cb   : > { %v977_v54 = vpop.permute.xlu0 %976 }
 0x3cc   : > { %1799 = vmatpush3.msra.mxu1 %v977_v54  ;;  %1973 = vpow2.f32 %v1137_v62 }
 0x3cd   : > { %1808 = vmatprep.subr.mxu1 %v2319_v1 }
 0x3cf   : > { %v1301_v4 = vpop.xlane.xlu1 %1300 }
 0x3d0   : > { %v1302_v5 = vsub.f32 %v1298_v45, %v1301_v4 }
 0x3d2   : > { %v1303_v8 = vmul.f32 1.442695, %v1302_v5 }
 0x3d6   : > { %v1974_v63 = vpop.eup %1973 }
 0x3d7   : > { %v1139_v2 = vsel %vm724_vm2, %v1974_v63, 0.0 }
 0x431   : > { %v2788_v55 = vpop.f32.mrb[4].mxu1 }
 0x432   : > { %v1792_v56 = vpop.f32.mrb[5].mxu1 }
 0x435   : > { %v961_v57 = vpop.f32.mrb[6].mxu1 }
 0x436   : > { %v965_v58 = vsel %vm801_vm3, -1e+09, %v961_v57  ;;  %v1797_v59 = vpop.f32.mrb[7].mxu1 }
 0x437   : > { %v966_v60 = vsel %vm724_vm2, %v965_v58, -inf }
 0x438   : > { %967 = vmax.xlane.f32.xlu1 %v966_v60 }
 0x449   : > { %1308 = vrot.lane.b32.xlu1 %v719_v28, %s2322_s24 }
 0x46d   : > { %1140 = vadd.xlane.f32.xlu1 %v1139_v2 }
 0x4c5   : > { %v968_v6 = vpop.xlane.xlu1 %967 }
 0x4c6   : > { %v969_v7 = vsub.f32 %v965_v58, %v968_v6 }
 0x4c8   : > { %v970_v9 = vmul.f32 1.442695, %v969_v7 }
 0x4c9   : > { %v1309_v13 = vpop.permute.xlu1 %1308 }
 0x4ca   : > { %1975 = vpow2.f32 %v970_v9 }
 0x4cb   : > { %1977 = vpow2.f32 %v1303_v8 }
 0x4d4   : > { %v1976_v10 = vpop.eup %1975 }
 0x4d5   : > { %1801 = vmatmul.mubr.msk.f32.vlgmr.msra.gmra.mrb[8].mxu1 %vm724_vm2, %v1976_v10  ;;  %v972_v11 = vsel %vm724_vm2, %v1976_v10, 0.0  ;;  %v1978_v12 = vpop.eup %1977 }
 0x4d6   : > { %1809 = vmatpush3.msra.mxu1 %v1143_v3  ;;  %973 = vadd.xlane.f32.xlu0 %v972_v11  ;;  %v1305_v14 = vsel %vm724_vm2, %v1978_v12, 0.0 }
 0x4d7   : > { %1810 = vmatprep.mubr.msk.f32.mxu1 %vm2318_vm0, %v2319_v1  ;;  %1818 = vmatprep.subr.mxu1 %v2319_v1 }
 0x4d9   : > { %1811 = vmatmul.mubr.msk.f32.vlgmr.msra.gmra.mrb[10].mxu1 %vm724_vm2, %v1974_v63 }
 0x4da   : > { %1819 = vmatpush3.msra.mxu1 %v1309_v13  ;;  %1306 = vadd.xlane.f32.xlu0 %v1305_v14 }
 0x4db   : > { %1820 = vmatprep.mubr.msk.f32.mxu1 %vm2318_vm0, %v2319_v1 }
 0x4dd   : > { %1821 = vmatmul.mubr.msk.f32.vlgmr.msra.gmra.mrb[12].mxu1 %vm724_vm2, %v1978_v12 }
 0x4de   : > { %810 = vadd.xlane.f32.xlu0 %v809_v15 }
 0x4fa   : > { %v1141_v19 = vpop.xlane.xlu1 %1140 }
 0x563   : > { %v974_v16 = vpop.xlane.xlu0 %973 }
 0x564   : > { %1979 = vrcp.f32 %v974_v16 }
 0x565   : > { %1981 = vrcp.f32 %v1141_v19 }
 0x567   : > { %v1307_v23 = vpop.xlane.xlu0 %1306 }
 0x568   : > { %1983 = vrcp.f32 %v1307_v23 }
 0x56b   : > { %v811_v35 = vpop.xlane.xlu0 %810 }
 0x56c   : > { %1985 = vrcp.f32 %v811_v35 }
 0x56e   : > { %v1980_v1 = vpop.eup %1979 }
 0x56f   : > { %v1982_v28 = vpop.eup %1981 }
 0x572   : > { %v1984_v32 = vpop.eup %1983 }
 0x576   : > { %v1986_v36 = vpop.eup %1985 }
 0x577   : > { %v886_v38 = vmul.f32 %v1986_v36, %v2788_v55 }
 0x5a8   : > { %v1048_v25 = vpop.f32.mrb[8].mxu1 }
 0x5a9   : > { %v1053_v26 = vmul.f32 %v1980_v1, %v1048_v25  ;;  %v1802_v27 = vpop.f32.mrb[9].mxu1 }
 0x5ab   : > { %1387 = vrot.lane.b32.xlu1 %v1053_v26, %s2323_s4 }
 0x5ac   : > { %v1214_v29 = vpop.f32.mrb[10].mxu1 }
 0x5ad   : > { %v1219_v30 = vmul.f32 %v1982_v28, %v1214_v29  ;;  %v1812_v31 = vpop.f32.mrb[11].mxu1 }
 0x5af   : > { %1391 = vrot.lane.b32.xlu0 %v1219_v30, %s2324_s16 }
 0x5b0   : > { %v1380_v0 = vpop.f32.mrb[12].mxu1 }
 0x5b1   : > { %v1385_v33 = vmul.f32 %v1984_v32, %v1380_v0  ;;  %v1822_v34 = vpop.f32.mrb[13].mxu1 }
 0x5b3   : > { %1395 = vrot.lane.b32.xlu1 %v1385_v33, %s2325_s22 }
 0x61d   : > { %v1388_v37 = vpop.permute.xlu1 %1387 }
 0x61e   : > { %v1398_v40 = vsel %vm724_vm2, %v886_v38, %v1388_v37 }
 0x621   : > { %v1392_v39 = vpop.permute.xlu0 %1391 }
 0x622   : > { %v1400_v41 = vsel %vm1399_vm4, %v1398_v40, %v1392_v39 }
 0x625   : > { %v1396_v42 = vpop.permute.xlu1 %1395 }
 0x626   : > { %v1402_v43 = vsel %vm1401_vm5, %v1400_v41, %v1396_v42 }
 0x627   : > { %1832 = vmatmul.mubr.msk.f32.vlgmr.msra.gmra.mrb[8].mxu0 %vm492_vm1, %v1402_v43 }
 0x6fa   : > { %v1476_v44 = vpop.f32.mrb[8].mxu0 }
 0x6fb   : > { %1480 = vst.msk [vmem:[%s486_s17] sm:$0xff] %vm492_vm1, %v1476_v44  ;;  %v1833_v45 = vpop.f32.mrb[9].mxu0 }
 0x6fc   : > { %2232 = shalt.err (!%p2229_p8)
}
 0x6fd   : > { %s2233_s5 = scalar_lea.hbm %s2814_s1, 128  ;;  %s2237_s8 = scalar_lea.hbm %s2933_s19, 256 }
 0x6fe   : > { %p2234_p12 = scmp.ne.s32.totalorder %s2814_s1, %s2233_s5  ;;  %p2238_p4 = scmp.lt.u32.totalorder %s2814_s1, %s2933_s19 }
 0x6ff   : > { %p2239_p0 = scmp.lt.u32.totalorder %s2237_s8, %s2233_s5  ;;  %p2241_p7 = scmp.lt.u32.totalorder %s2233_s5, %s2814_s1 }
 0x700   : > { %p2235_p5 = pnand %p2234_p12, %p2934_p9 }
 0x701   : > { %p2240_p13 = por %p2239_p0, %p2238_p4 }
 0x702   : > { %p2236_p2 = pneg %p2235_p5 }
 0x703   : > { %p2242_p11 = por %p2241_p7, %p2240_p13 }
 0x705   : > { %p2243_p10 = pnand %p2242_p11, %p2236_p2 }
 0x707   : > { %2246 = shalt.err (!%p2243_p10)
}
 0x708   : > { %1882 = dma.vmem_to_hbm [thread:$0]  (%p2934_p9), %s2816_s18, 128, %s2814_s1, %s1482_s13  }
 0x709 PF: > { %s2935_s24 = sld [smem:[#allocation24_spill]]  ;;  %s2936_s4 = sld [smem:[#allocation25_spill]] }
 0x70a   : > { %p2938_p6 = scmp.ge.s32.totalorder %s2305_s30, 2 }
 0x70f   : > { %s1507_s16 = sand.u32 1, %s2935_s24   ;;  %p2937_p3 = scmp.ne.s32.totalorder %s2936_s4, 0 }
 0x710   : > { %s1508_s22 = scalar_lea.sflag [#allocation4], %s1507_s16 }
 0x711   : > { %p1911_p1 = pnand %p2938_p6, %p2937_p3 }
 0x713   : > { %2288 = dma.done.wait (!%p1911_p1), %s1508_s22, 128  }
 0x714   : > { %2290 = vsyncadd (!%p1911_p1), %s1508_s22, 4294967168  ;;  %s2939_s30 = sld [smem:[#allocation26_spill]]  ;;  %s2940_s10 = sld [smem:[#allocation28_spill]] }
 0x715   : > { %s2941_s27 = smov %s2297_s28  ;;  %s2942_s28 = smov %s2301_s29 }
 0x71a   : > { %p29_p8 = scmp.ge.s32.totalorder %s2939_s30, 4   ;;  %s2943_s29 = smov %s2940_s10 }
 0x71c   :  { %31 = sbr.rel (!%p29_p8) target bundleno = 16 (0x10), region = 150 }
 0x723   :  { %1513 = vsyncpa [#allocation3], 1 }
 0x724   :  { %1515 = vsyncpa [#allocation3 + $0x1], 1 }
 0x725   :  { %1516 = vsyncpa [#allocation6], 1 }
 0x726   :  { %1518 = vsyncpa [#allocation6 + $0x1], 1 }
 0x727   :  { %1519 = vsyncpa [#allocation9], 1 }
 0x728   :  { %1521 = vsyncpa [#allocation9 + $0x1], 1 }
 0x729   :  { %1522 = vsyncpa [#allocation12], 1 }
 0x72a   :  { %1523 = vsyncpa [#allocation15], 1 }
 0x72b   :  { %1524 = vsyncpa [#allocation4], 1 }
 0x72c   :  { %1526 = vsyncpa [#allocation4 + $0x1], 1 }

</bundles_post_ra>
